<compile_context>
chip_gen: v7x
topology: tpu7x:2x2x1
jax: 0.10.0
libtpu: 0.0.40
codegen_flags: <defaults>
</compile_context>

<pallas_src>
import jax
import jax.numpy as jnp
from jax.experimental import pallas as pl
from jax.experimental.pallas import tpu as pltpu


LANE = 128                          # TPU vreg lane width (fast axis)
TARGET_BLOCK_BYTES = 4 * 1024 * 1024  # ~4 MiB per tile (dtype-scaled row count)


def ws_zero_kernel(x_ref, o_ref):
    # Elementwise multiply-by-zero on a lane-dense (row_block, 128) tile.
    # Keeps NaN/Inf -> NaN behaviour of torch's x.mul(0.0).
    o_ref[...] = x_ref[...] * 0.0


def ws_zero(x, x_id=None, stride=1, bn_train=False):
    """Pallas implementation of WSZero.forward (NCHW input for stride != 1)."""
    del x_id, bn_train  # unused by the module's forward

    if stride != 1:
        # TODO(synk): could fold the H/W stride into the BlockSpec index_map /
        # a strided pl.ds to avoid this XLA gather pass; kept as wrapper glue.
        x = x[:, :, ::stride, ::stride]

    out_shape = x.shape
    dtype = x.dtype
    total = int(x.size)
    if total == 0:
        return jnp.zeros(out_shape, dtype)

    itemsize = jnp.dtype(dtype).itemsize
    flat = jnp.ravel(x)

    rem = total % LANE
    if rem == 0:
        # Common path: free reshape to a lane-dense slab, no pad, no slice.
        rows = total // LANE
        x2d = flat.reshape(rows, LANE)
        trim = None
    else:
        # Rare fallback: pad only up to the next lane boundary; padded tail is
        # multiplied by zero and sliced off afterwards.
        padded = total + (LANE - rem)
        rows = padded // LANE
        x2d = jnp.pad(flat, (0, padded - total)).reshape(rows, LANE)
        trim = total

    # Dtype-scaled row tile: ~4 MiB per tile (f32 -> 8192 rows, bf16 -> 16384).
    target_rows = max(8, TARGET_BLOCK_BYTES // (LANE * itemsize))
    if rows <= target_rows:
        row_block = rows           # single block == full array dims (legal)
    else:
        row_block = target_rows    # multiple of 8; last partial block masked
    grid = (pl.cdiv(rows, row_block),)

    out2d = pl.pallas_call(
        ws_zero_kernel,
        grid=grid,
        in_specs=[pl.BlockSpec((row_block, LANE), lambda i: (i, 0))],
        out_specs=pl.BlockSpec((row_block, LANE), lambda i: (i, 0)),
        out_shape=jax.ShapeDtypeStruct((rows, LANE), dtype),
        compiler_params=pltpu.CompilerParams(
            dimension_semantics=("parallel",),       # megacore sharding
            vmem_limit_bytes=32 * 1024 * 1024,       # need ~16 MiB + headroom
        ),
        cost_estimate=pl.CostEstimate(
            flops=total,
            transcendentals=0,
            bytes_accessed=2 * total * itemsize,
        ),
    )(x2d)

    if trim is None:
        return out2d.reshape(out_shape)
    return out2d.reshape(-1)[:trim].reshape(out_shape)


def _ws_zero_reference(x, stride=1):
    """Pure-JAX reference matching the PyTorch module."""
    if stride == 1:
        return x * 0.0
    return x[:, :, ::stride, ::stride] * 0.0


if __name__ == "__main__":
    key = jax.random.PRNGKey(0)
    k0, k1, k2 = jax.random.split(key, 3)

    # Primary test shape from the module's typical NCHW usage.
    x = jax.random.normal(k0, (2, 4, 16, 16), jnp.float32)
    # Odd shape exercising the total % 128 != 0 fallback path.
    x_odd = jax.random.normal(k1, (2, 3, 7, 9), jnp.float32)
    # bf16 input exercising the dtype-scaled tile sizing.
    x_bf16 = jax.random.normal(k2, (2, 4, 16, 16), jnp.float32).astype(jnp.bfloat16)

    x_id = 0  # ignored by the module's forward

    for xin in (x, x_odd, x_bf16):
        for stride in (1, 2):
            out = jax.block_until_ready(ws_zero(xin, x_id, stride=stride))
            ref = _ws_zero_reference(xin, stride=stride)
            assert out.shape == ref.shape, (stride, out.shape, ref.shape)
            assert out.dtype == ref.dtype, (stride, out.dtype, ref.dtype)
            assert jnp.array_equal(out, ref), float(
                jnp.max(jnp.abs((out - ref).astype(jnp.float32))))

    print("KERNEL_OK")
</pallas_src>

<mosaic_0001>
module attributes {stable_mosaic.version = 11 : i64} {
  func.func @ws_zero_kernel(%arg0: i32, %arg1: memref<16x128xf32, #tpu.memory_space<vmem>>, %arg2: memref<16x128xf32, #tpu.memory_space<vmem>>) attributes {dimension_semantics = [#tpu.dimension_semantics<parallel>], iteration_bounds = array<i64: 1>, scalar_prefetch = 0 : i64, scratch_operands = 0 : i64, tpu.core_type = #tpu.core_type<tc>, window_params = [{transform_indices = @transform_0, window_bounds = array<i64: 16, 128>}, {transform_indices = @transform_1, window_bounds = array<i64: 16, 128>}]} {
    %c0 = arith.constant 0 : index
    %c0_0 = arith.constant 0 : index
    %0 = vector.load %arg1[%c0, %c0_0] : memref<16x128xf32, #tpu.memory_space<vmem>>, vector<16x128xf32>
    %cst = arith.constant 0.000000e+00 : f32
    %1 = vector.broadcast %cst : f32 to vector<16x128xf32>
    %2 = arith.mulf %0, %1 : vector<16x128xf32>
    %c0_1 = arith.constant 0 : index
    %c0_2 = arith.constant 0 : index
    %3 = vector.load %arg2[%c0_1, %c0_2] : memref<16x128xf32, #tpu.memory_space<vmem>>, vector<16x128xf32>
    tpu.vector_store %arg2[%c0_1, %c0_2], %2 {strides = array<i32>} : memref<16x128xf32, #tpu.memory_space<vmem>>, vector<16x128xf32>,
    return
  }
  func.func @transform_0(%arg0: i32) -> (i32, i32) {
    %c0_i32 = arith.constant 0 : i32
    %c0_i32_0 = arith.constant 0 : i32
    return %arg0, %c0_i32 : i32, i32
  }
  func.func @transform_1(%arg0: i32) -> (i32, i32) {
    %c0_i32 = arith.constant 0 : i32
    %c0_i32_0 = arith.constant 0 : i32
    return %arg0, %c0_i32 : i32, i32
  }
}

</mosaic_0001>

<bundles_post_ra>
// kernel: tpu_custom_call.1
= control target key start
LH: loop header
LB: loop body
LE: loop exit
PB: predicated region body
PF: predicated region fallthrough
CT: control target
= control target key end

     0   :  { %6 = vsyncpa [#allocation3], 0  ;;  %s136_s0 = inlined_call_operand.hbm [shape: f32[16,128], index: 0, kind: input, shape index: {}]   ;;  %s137_s1 = inlined_call_operand.hbm [shape: f32[16,128], index: 1, kind: output, shape index: {}]  }
   0x1   :  { %7 = vsyncpa [#allocation4], 0  ;;  %s98_s6 = smov [#allocation2]   ;;  %s50_s10 = scalar_lea.hbm %s136_s0, 256 }
   0x2   :  { %s13_s7 = sshll.u32 %s98_s6, 4  ;;  %p51_p0 = scmp.ne.s32.totalorder %s136_s0, %s50_s10  ;;  %s14_s7 = int_to_ptr.vmem [resolvable:$true] %s13_s7 }
   0x3   :  { %p54_p1 = scmp.lt.u32.totalorder %s50_s10, %s136_s0 }
   0x5   :  { %p56_p2 = pnand %p54_p1, %p51_p0 }
   0x7   :  { %59 = shalt.err (!%p56_p2)
}
   0x8   :  { %s60_s15 = scalar_lea.vmem %s14_s7, 256  ;;  %p65_p4 = scmp.lt.s32.totalorder %s14_s7, %s14_s7 }
   0x9   :  { %p61_p3 = scmp.ne.s32.totalorder %s14_s7, %s60_s15  ;;  %p66_p5 = scmp.lt.s32.totalorder %s60_s15, %s60_s15 }
   0xb   :  { %p67_p6 = por %p66_p5, %p65_p4 }
   0xd   :  { %p68_p7 = pnand %p67_p6, %p61_p3 }
   0xf   :  { %71 = shalt.err (!%p68_p7)
}
  0x10   :  { %s99_s16 = smov 128   ;;  %s100_s17 = smov 8  }
  0x11   :  { %19 = dma.hbm_to_vmem [thread:$0]  %s136_s0, 256, %s14_s7, [#allocation3], %s99_s16, %s99_s16, %s100_s17  }
  0x12   :  { %94 = dma.done.wait [#allocation3], 256  }
  0x13   :  { %95 = vsyncadd [#allocation3], 4294967040  ;;  %s101_s20 = smov [#allocation5]   ;;  %v23_v0 = vld [vmem:[#allocation2] sm:$0xff]  ;;  %v24_v1 = vld [vmem:[#allocation2 + $0x8] sm:$0xff] }
  0x14   :  { %s34_s21 = sshll.u32 %s101_s20, 4  ;;  %v25_v2 = vmul.f32 0.0, %v23_v0  ;;  %v26_v3 = vmul.f32 0.0, %v24_v1  ;;  %s35_s21 = int_to_ptr.vmem [resolvable:$true] %s34_s21 }
  0x15   :  { %s72_s22 = scalar_lea.vmem %s35_s21, 256  ;;  %p77_p9 = scmp.lt.s32.totalorder %s35_s21, %s35_s21 }
  0x16   :  { %27 = vst [vmem:[#allocation5] sm:$0xff] %v25_v2  ;;  %28 = vst [vmem:[#allocation5 + $0x8] sm:$0xff] %v26_v3  ;;  %p73_p8 = scmp.ne.s32.totalorder %s35_s21, %s72_s22  ;;  %p78_p10 = scmp.lt.s32.totalorder %s72_s22, %s72_s22 }
  0x18   :  { %p79_p11 = por %p78_p10, %p77_p9 }
  0x1a   :  { %p80_p12 = pnand %p79_p11, %p73_p8 }
  0x1c   :  { %83 = shalt.err (!%p80_p12)
}
  0x1d   :  { %s84_s24 = scalar_lea.hbm %s137_s1, 256 }
  0x1e   :  { %p85_p13 = scmp.ne.s32.totalorder %s137_s1, %s84_s24  ;;  %p88_p0 = scmp.lt.u32.totalorder %s84_s24, %s137_s1 }
  0x20   :  { %p90_p1 = pnand %p88_p0, %p85_p13 }
  0x22   :  { %93 = shalt.err (!%p90_p1)
}
  0x23   :  { %40 = dma.vmem_to_hbm [thread:$0]  %s35_s21, 256, %s137_s1, [#allocation4], %s99_s16, %s99_s16, %s100_s17  }
  0x24   :  { %96 = dma.done.wait [#allocation4], 256  }
  0x25   :  { %97 = vsyncadd [#allocation4], 4294967040 }
  0x26   :  { %44 = vsyncpa [#allocation3], 1 }
  0x27   :  { %45 = vsyncpa [#allocation4], 1 }

</bundles_post_ra>
